<compile_context>
chip_gen: v7x
topology: tpu7x:2x2x1
jax: 0.10.0
libtpu: 0.0.40
codegen_flags: <defaults>
</compile_context>

<pallas_src>
import functools

import jax
import jax.numpy as jnp
from jax.experimental import pallas as pl
from jax.experimental.pallas import tpu as pltpu


def _round_up(n, m):
    return ((n + m - 1) // m) * m


def _pick_tb(bpad, tb_max):
    """Batch tile: >=4 grid steps when possible, multiple of 8, capped at tb_max."""
    tb = _round_up(max(bpad // 4, 8), 8)
    return min(tb, tb_max, bpad)


def _noisy_mlp_kernel(x_ref, w1_ref, b1_ref, w2_ref, b2_ref, o_ref):
    # hidden = relu(x @ W1 + b1): MXU matmul (bf16 in, f32 acc) + VPU add/max.
    x = x_ref[...].astype(jnp.bfloat16)            # no-op if x already bf16
    h = jnp.dot(x, w1_ref[...], preferred_element_type=jnp.float32)
    h = jnp.maximum(h + b1_ref[...], 0.0)          # (tb, H) + (1, H) broadcast
    # out = hidden @ W2 + b2 on a lane-dense 128-wide (padded) class axis.
    o = jnp.dot(h.astype(jnp.bfloat16), w2_ref[...],
                preferred_element_type=jnp.float32)
    o_ref[...] = (o + b2_ref[...]).astype(o_ref.dtype)


@functools.partial(jax.jit, static_argnames=("n_cls", "tb_max", "out_dtype"))
def noisy_mlp_forward(x, w1, b1, w2, b2, *, n_cls, tb_max=512,
                      out_dtype=jnp.float32):
    """Fused NoisyMLP forward.  x: (B, D) f32 or bf16.  Returns (B, n_cls)."""
    B, D = x.shape
    H = w1.shape[1]
    Cpad = w2.shape[1]

    # Pad the batch only up to a multiple of 8 sublanes (tiny; usually a no-op).
    Bpad = _round_up(B, 8)
    xp = x if Bpad == B else jnp.pad(x, ((0, Bpad - B), (0, 0)))

    tb = _pick_tb(Bpad, tb_max)
    nb = pl.cdiv(Bpad, tb)   # ragged last tile handled by partial-block masking

    x_bytes = xp.dtype.itemsize
    w_bytes = w1.dtype.itemsize
    o_bytes = jnp.dtype(out_dtype).itemsize
    weights_bytes = (D * H + H * Cpad) * w_bytes + (H + Cpad) * b1.dtype.itemsize

    # For very large input_dim, single-buffer the constant-index weight specs so
    # the resident weights fit v7x's 64 MiB VMEM; a no-op for small models.
    big_weights = weights_bytes > (8 << 20)

    def _wspec(shape):
        if big_weights:
            return pl.BlockSpec(shape, lambda i: (0, 0),
                                pipeline_mode=pl.Buffered(1))
        return pl.BlockSpec(shape, lambda i: (0, 0))

    wbuf = 1 if big_weights else 2
    vmem_need = (2 * tb * D * x_bytes          # x double buffer
                 + 2 * tb * Cpad * o_bytes     # out double buffer
                 + wbuf * weights_bytes)       # resident weights / biases
    # Never below the 32 MiB scoped default; headroom for intermediates.
    vmem_limit = min(max(32 << 20, 2 * vmem_need + (4 << 20)), 112 << 20)

    flops = 2 * Bpad * D * H + 2 * Bpad * H * Cpad
    bytes_accessed = (Bpad * D * x_bytes + weights_bytes + Bpad * Cpad * o_bytes)

    out = pl.pallas_call(
        _noisy_mlp_kernel,
        out_shape=jax.ShapeDtypeStruct((Bpad, Cpad), out_dtype),
        grid_spec=pl.GridSpec(
            grid=(nb,),
            in_specs=[
                pl.BlockSpec((tb, D), lambda i: (i, 0)),   # x: tiled over batch
                _wspec((D, H)),                            # W1: VMEM-resident
                _wspec((1, H)),                            # b1: VMEM-resident
                _wspec((H, Cpad)),                         # W2: VMEM-resident
                _wspec((1, Cpad)),                         # b2: VMEM-resident
            ],
            out_specs=pl.BlockSpec((tb, Cpad), lambda i: (i, 0)),
        ),
        compiler_params=pltpu.CompilerParams(
            dimension_semantics=("parallel",),
            vmem_limit_bytes=int(vmem_limit)),
        cost_estimate=pl.CostEstimate(
            flops=flops, transcendentals=0, bytes_accessed=bytes_accessed),
    )(xp, w1, b1, w2, b2)

    # Inside the same jit, so this slice fuses into the consumer.
    return out[:B, :n_cls]


def init_noisy_mlp_params(key, input_dim, n_cls):
    """PyTorch-style uniform(+-1/sqrt(fan_in)) init.

    Layer 0: Linear(input_dim, input_dim)   (noise_layer=0 => single hidden
             layer whose width is input_dim)
    Layer 1: Linear(input_dim, n_cls)

    Weights stored as (in, out) bf16; W2/b2 zero-padded along the class axis to
    a multiple of 128 lanes for lane-dense MXU tiles and stores.
    """
    k1, k2, k3, k4 = jax.random.split(key, 4)
    hidden = input_dim
    c_pad = _round_up(max(n_cls, 128), 128)
    bound1 = 1.0 / jnp.sqrt(jnp.float32(input_dim))
    bound2 = 1.0 / jnp.sqrt(jnp.float32(hidden))

    w1 = jax.random.uniform(k1, (input_dim, hidden), jnp.float32,
                            minval=-bound1, maxval=bound1).astype(jnp.bfloat16)
    b1 = jax.random.uniform(k2, (1, hidden), jnp.float32,
                            minval=-bound1, maxval=bound1)
    w2_core = jax.random.uniform(k3, (hidden, n_cls), jnp.float32,
                                 minval=-bound2, maxval=bound2)
    b2_core = jax.random.uniform(k4, (1, n_cls), jnp.float32,
                                 minval=-bound2, maxval=bound2)
    w2 = jnp.zeros((hidden, c_pad), jnp.float32).at[:, :n_cls].set(
        w2_core).astype(jnp.bfloat16)
    b2 = jnp.zeros((1, c_pad), jnp.float32).at[:, :n_cls].set(b2_core)
    return w1, b1, w2, b2


def reference_forward(x, w1, b1, w2, b2, n_cls):
    """Pure-JAX reference using the same bf16-weight / f32-accumulate path."""
    h = jnp.dot(x.astype(jnp.bfloat16), w1,
                preferred_element_type=jnp.float32) + b1
    h = jnp.maximum(h, 0.0)
    o = jnp.dot(h.astype(jnp.bfloat16), w2,
                preferred_element_type=jnp.float32) + b2
    return o[:, :n_cls]


if __name__ == "__main__":
    # Small shapes consistent with the module's forward: x is (batch, input_dim).
    input_dim, n_cls = 128, 32

    key = jax.random.PRNGKey(0)
    kx, kx2, kp = jax.random.split(key, 3)
    w1, b1, w2, b2 = init_noisy_mlp_params(kp, input_dim, n_cls)

    # Case 1: batch that tiles evenly (4 grid steps of 64 rows => >=2 per TC).
    x = jax.random.normal(kx, (256, input_dim), jnp.float32)
    out = jax.block_until_ready(
        noisy_mlp_forward(x, w1, b1, w2, b2, n_cls=n_cls))
    ref = reference_forward(x, w1, b1, w2, b2, n_cls)
    assert out.shape == (256, n_cls)
    assert jnp.allclose(out, ref, atol=1e-2, rtol=1e-2)

    # Case 2: ragged batch exercising the partial last tile (no full-pad copy).
    x2 = jax.random.normal(kx2, (200, input_dim), jnp.float32)
    out2 = jax.block_until_ready(
        noisy_mlp_forward(x2, w1, b1, w2, b2, n_cls=n_cls))
    ref2 = reference_forward(x2, w1, b1, w2, b2, n_cls)
    assert out2.shape == (200, n_cls)
    assert jnp.allclose(out2, ref2, atol=1e-2, rtol=1e-2)

    print("KERNEL_OK")
</pallas_src>

<mosaic_0001>
module attributes {stable_mosaic.version = 11 : i64} {
  func.func @_noisy_mlp_kernel(%arg0: i32, %arg1: memref<64x128xf32, #tpu.memory_space<vmem>>, %arg2: memref<128x128xbf16, #tpu.memory_space<vmem>>, %arg3: memref<1x128xf32, #tpu.memory_space<vmem>>, %arg4: memref<128x128xbf16, #tpu.memory_space<vmem>>, %arg5: memref<1x128xf32, #tpu.memory_space<vmem>>, %arg6: memref<64x128xf32, #tpu.memory_space<vmem>>) attributes {dimension_semantics = [#tpu.dimension_semantics<parallel>], iteration_bounds = array<i64: 4>, scalar_prefetch = 0 : i64, scratch_operands = 0 : i64, tpu.core_type = #tpu.core_type<tc>, window_params = [{transform_indices = @transform_0, window_bounds = array<i64: 64, 128>}, {pipeline_mode = #tpu.pipeline_mode<synchronous>, transform_indices = @transform_1, window_bounds = array<i64: 128, 128>}, {pipeline_mode = #tpu.pipeline_mode<synchronous>, transform_indices = @transform_2, window_bounds = array<i64: 1, 128>}, {pipeline_mode = #tpu.pipeline_mode<synchronous>, transform_indices = @transform_3, window_bounds = array<i64: 128, 128>}, {pipeline_mode = #tpu.pipeline_mode<synchronous>, transform_indices = @transform_4, window_bounds = array<i64: 1, 128>}, {transform_indices = @transform_5, window_bounds = array<i64: 64, 128>}]} {
    %c0 = arith.constant 0 : index
    %c0_0 = arith.constant 0 : index
    %0 = vector.load %arg1[%c0, %c0_0] : memref<64x128xf32, #tpu.memory_space<vmem>>, vector<64x128xf32>
    %1 = arith.truncf %0 : vector<64x128xf32> to vector<64x128xbf16>
    %c0_1 = arith.constant 0 : index
    %c0_2 = arith.constant 0 : index
    %2 = vector.load %arg2[%c0_1, %c0_2] : memref<128x128xbf16, #tpu.memory_space<vmem>>, vector<128x128xbf16>
    %cst = arith.constant dense<0.000000e+00> : vector<64x128xf32>
    %3 = tpu.matmul %1, %2, %cst {dimension_numbers = #tpu.dot_dimension_numbers<[1], [0], [0], [1], [0, 0, 1, 1], [], []>} : vector<64x128xbf16>, vector<128x128xbf16>, vector<64x128xf32> -> vector<64x128xf32>
    %c0_3 = arith.constant 0 : index
    %c0_4 = arith.constant 0 : index
    %4 = vector.load %arg3[%c0_3, %c0_4] : memref<1x128xf32, #tpu.memory_space<vmem>>, vector<1x128xf32>
    %5 = vector.broadcast %4 : vector<1x128xf32> to vector<64x128xf32>
    %6 = arith.addf %3, %5 : vector<64x128xf32>
    %cst_5 = arith.constant 0.000000e+00 : f32
    %7 = vector.broadcast %cst_5 : f32 to vector<64x128xf32>
    %8 = arith.maximumf %6, %7 : vector<64x128xf32>
    %9 = arith.truncf %8 : vector<64x128xf32> to vector<64x128xbf16>
    %c0_6 = arith.constant 0 : index
    %c0_7 = arith.constant 0 : index
    %10 = vector.load %arg4[%c0_6, %c0_7] : memref<128x128xbf16, #tpu.memory_space<vmem>>, vector<128x128xbf16>
    %cst_8 = arith.constant dense<0.000000e+00> : vector<64x128xf32>
    %11 = tpu.matmul %9, %10, %cst_8 {dimension_numbers = #tpu.dot_dimension_numbers<[1], [0], [0], [1], [0, 0, 1, 1], [], []>} : vector<64x128xbf16>, vector<128x128xbf16>, vector<64x128xf32> -> vector<64x128xf32>
    %c0_9 = arith.constant 0 : index
    %c0_10 = arith.constant 0 : index
    %12 = vector.load %arg5[%c0_9, %c0_10] : memref<1x128xf32, #tpu.memory_space<vmem>>, vector<1x128xf32>
    %13 = vector.broadcast %12 : vector<1x128xf32> to vector<64x128xf32>
    %14 = arith.addf %11, %13 : vector<64x128xf32>
    %c0_11 = arith.constant 0 : index
    %c0_12 = arith.constant 0 : index
    %15 = vector.load %arg6[%c0_11, %c0_12] : memref<64x128xf32, #tpu.memory_space<vmem>>, vector<64x128xf32>
    tpu.vector_store %arg6[%c0_11, %c0_12], %14 {strides = array<i32>} : memref<64x128xf32, #tpu.memory_space<vmem>>, vector<64x128xf32>,
    return
  }
  func.func @transform_0(%arg0: i32) -> (i32, i32) {
    %c0_i32 = arith.constant 0 : i32
    %c0_i32_0 = arith.constant 0 : i32
    return %arg0, %c0_i32 : i32, i32
  }
  func.func @transform_1(%arg0: i32) -> (i32, i32) {
    %c0_i32 = arith.constant 0 : i32
    %c0_i32_0 = arith.constant 0 : i32
    %c0_i32_1 = arith.constant 0 : i32
    return %c0_i32, %c0_i32_0 : i32, i32
  }
  func.func @transform_2(%arg0: i32) -> (i32, i32) {
    %c0_i32 = arith.constant 0 : i32
    %c0_i32_0 = arith.constant 0 : i32
    %c0_i32_1 = arith.constant 0 : i32
    return %c0_i32, %c0_i32_0 : i32, i32
  }
  func.func @transform_3(%arg0: i32) -> (i32, i32) {
    %c0_i32 = arith.constant 0 : i32
    %c0_i32_0 = arith.constant 0 : i32
    %c0_i32_1 = arith.constant 0 : i32
    return %c0_i32, %c0_i32_0 : i32, i32
  }
  func.func @transform_4(%arg0: i32) -> (i32, i32) {
    %c0_i32 = arith.constant 0 : i32
    %c0_i32_0 = arith.constant 0 : i32
    %c0_i32_1 = arith.constant 0 : i32
    return %c0_i32, %c0_i32_0 : i32, i32
  }
  func.func @transform_5(%arg0: i32) -> (i32, i32) {
    %c0_i32 = arith.constant 0 : i32
    %c0_i32_0 = arith.constant 0 : i32
    return %arg0, %c0_i32 : i32, i32
  }
}

</mosaic_0001>

<bundles_post_ra>
// kernel: noisy_mlp_forward.1
= control target key start
LH: loop header
LB: loop body
LE: loop exit
PB: predicated region body
PF: predicated region fallthrough
CT: control target
= control target key end

     0   :  { %10 = vsyncpa [#allocation3], 0  ;;  %s1212_s0 = inlined_call_operand.hbm [shape: f32[256,128], index: 0, kind: input, shape index: {}]   ;;  %s1213_s1 = inlined_call_operand.hbm [shape: bf16[128,128], index: 1, kind: input, shape index: {}]   ;;  %s1214_s2 = inlined_call_operand.vmem [shape: f32[1,128], index: 2, kind: input, shape index: {}]   ;;  %s1215_s3 = inlined_call_operand.hbm [shape: bf16[128,128], index: 3, kind: input, shape index: {}]   ;;  %s1216_s4 = inlined_call_operand.vmem [shape: f32[1,128], index: 4, kind: input, shape index: {}]   ;;  %s1217_s5 = inlined_call_operand.vmem [shape: f32[256,128], index: 5, kind: output, shape index: {}]  }
   0x1   :  { %12 = vsyncpa [#allocation3 + $0x1], 0 }
   0x2   :  { %13 = vsyncpa [#allocation5], 0  ;;  %s1018_s18 = smov 0   ;;  %s1020_s19 = smov 0  }
   0x3   :  { %s1022_s20 = smov 0   ;;  %s1024_s21 = smov 0  }
   0x4 LB: > { %s667_s22 = sadd.s32 4294967295, %s979_s21   ;;  %p39_p0 = scmp.ne.s32.totalorder %s971_s19, %s967_s18  ;;  %s979_s21 = sphi %s1024_s21, %s1233_s21   ;;  %s975_s20 = sphi %s1022_s20, %s1232_s20   ;;  %s971_s19 = sphi %s1020_s19, %s1231_s19   ;;  %s967_s18 = sphi %s1018_s18, %s1230_s18  }
   0x5   : > { %p1040_p1 = scmp.eq.s32.totalorder %s667_s22, 0  ;;  %p669_p2 = scmp.ge.s32.totalorder %s979_s21, 1 }
   0x6   : > { %p160_p3 = scmp.lt.s32.totalorder %s979_s21, 5  ;;  %s981_s26 = smov [#allocation4]  }
   0x7   : > { %s1222_s23 = scalar_select %p1040_p1, 1, 0 }
   0x8   : > { %p1048_p4 = por %p1040_p1, %p39_p0  ;;  %p1052_p5 = pnand %p669_p2, %p160_p3 }
   0x9   : > { %s172_s27 = sshll.u32 %s981_s26, 4  ;;  %s982_s29 = smov [#allocation6]   ;;  %s173_s27 = int_to_ptr.vmem [resolvable:$true] %s172_s27 }
   0xa   : > { %s1223_s24 = scalar_select %p1048_p4, 1, 0 }
   0xb   : > { %s1224_s25 = scalar_select %p1052_p5, 1, 0 }
   0xc   : > { %p785_p6 = pneg %p1052_p5  ;;  %s188_s30 = sshll.u32 %s982_s29, 4  ;;  %s1064_s30 = int_to_ptr.vmem [resolvable:$true] %s188_s30 }
   0xd   : > { %s855_s8 = scalar_lea.hbm %s1213_s1, 1024 }
   0xe   : > { %p1060_p7 = pnand %p785_p6, %p1040_p1  ;;  %p856_p8 = scmp.ne.s32.totalorder %s1213_s1, %s855_s8 }
   0xf   : > { %p862_p12 = scmp.lt.u32.totalorder %s855_s8, %s1213_s1 }
  0x10   : > { %p857_p9 = pneg %p1060_p7 }
  0x12   : > { %p858_p10 = pnand %p857_p9, %p856_p8 }
  0x14   : > { %p859_p11 = pneg %p858_p10 }
  0x16   : > { %p864_p13 = pnand %p862_p12, %p859_p11 }
  0x18   : > { %867 = shalt.err (!%p864_p13)
}
  0x19   : > { %s868_s13 = scalar_lea.vmem %s173_s27, 1024  ;;  %p876_p6 = scmp.lt.s32.totalorder %s173_s27, %s173_s27 }
  0x1a   : > { %p869_p0 = scmp.ne.s32.totalorder %s173_s27, %s868_s13  ;;  %p877_p1 = scmp.lt.s32.totalorder %s868_s13, %s868_s13 }
  0x1c   : > { %p871_p2 = pnand %p869_p0, %p857_p9  ;;  %p878_p4 = por %p877_p1, %p876_p6 }
  0x1e   : > { %p872_p3 = pneg %p871_p2 }
  0x20   : > { %p879_p5 = pnand %p878_p4, %p872_p3 }
  0x22   : > { %882 = shalt.err (!%p879_p5)
}
  0x23   : > { %s983_s14 = smov 64   ;;  %s984_s15 = smov 4  }
  0x24   : > { %788 = dma.hbm_to_vmem [thread:$0]  (!%p1060_p7), %s1213_s1, 1024, %s173_s27, [#allocation5], %s983_s14, %s983_s14, %s984_s15  }
  0x25   : > { %s883_s29 = scalar_lea.hbm %s1215_s3, 1024 }
  0x26   : > { %p884_p8 = scmp.ne.s32.totalorder %s1215_s3, %s883_s29  ;;  %p890_p5 = scmp.lt.u32.totalorder %s883_s29, %s1215_s3 }
  0x28   : > { %p886_p1 = pnand %p884_p8, %p857_p9 }
  0x2a   : > { %p887_p4 = pneg %p886_p1 }
  0x2c   : > { %p892_p10 = pnand %p890_p5, %p887_p4 }
  0x2e   : > { %895 = shalt.err (!%p892_p10)
}
  0x2f   : > { %s896_s27 = scalar_lea.vmem %s1064_s30, 1024  ;;  %p904_p0 = scmp.lt.s32.totalorder %s1064_s30, %s1064_s30 }
  0x30   : > { %p897_p11 = scmp.ne.s32.totalorder %s1064_s30, %s896_s27  ;;  %p905_p2 = scmp.lt.s32.totalorder %s896_s27, %s896_s27 }
  0x32   : > { %p899_p12 = pnand %p897_p11, %p857_p9  ;;  %p906_p3 = por %p905_p2, %p904_p0 }
  0x34   : > { %p900_p13 = pneg %p899_p12 }
  0x36   : > { %p907_p6 = pnand %p906_p3, %p900_p13 }
  0x38   : > { %910 = shalt.err (!%p907_p6)
}
  0x39   : > { %791 = dma.hbm_to_vmem [thread:$0]  (!%p1060_p7), %s1215_s3, 1024, %s1064_s30, [#allocation5], %s983_s14, %s983_s14, %s984_s15  }
  0x3a   : > { %s1114_s12 = sadd.s32 1, %s979_s21   ;;  %s26_s13 = sadd.s32 1, %s975_s20 }
  0x3b   : > { %s23_s28 = ssub.s32 %s979_s21, %s1114_s12  ;;  %p33_p9 = scmp.ne.s32.totalorder %s975_s20, %s971_s19 }
  0x3c   : > { %p24_p8 = scmp.eq.s32.totalorder %s23_s28, 0  ;;  %p34_p1 = scmp.eq.s32.totalorder %s979_s21, 0 }
  0x3d   : > { %p798_p4 = scmp.lt.s32.totalorder %s979_s21, 4  ;;  %s205_s16 = sand.u32 1, %s975_s20  }
  0x3e   : > { %s1125_s17 = scalar_select %p24_p8, %s975_s20, %s26_s13  }
  0x3f   : > { %p35_p5 = por %p34_p1, %p33_p9  ;;  %s673_s18 = sshll.u32 %s205_s16, 6 }
  0x40   : > { %s702_s26 = sshll.u32 %s979_s21, 10  ;;  %s209_s30 = scalar_lea.vmem [#allocation2], %s673_s18 }
  0x41   : > { %s1131_s7 = scalar_lea.hbm %s1212_s0, %s702_s26  ;;  %s216_s14 = sshll.u32 %s209_s30, 4  ;;  %s1137_s14 = int_to_ptr.vmem [resolvable:$true] %s216_s14 }
  0x42   : > { %p1133_p7 = pnand %p798_p4, %p35_p5  ;;  %s1139_s8 = scalar_lea.sflag [#allocation3], %s205_s16 }
  0x43   : > { %s911_s9 = scalar_lea.hbm %s1131_s7, 1024  ;;  %s916_s11 = scalar_lea.hbm %s1212_s0, 4096 }
  0x44   : > { %p912_p10 = scmp.ne.s32.totalorder %s1131_s7, %s911_s9  ;;  %p913_p11 = pneg %p1133_p7 }
  0x45   : > { %p917_p0 = scmp.lt.u32.totalorder %s1131_s7, %s1212_s0  ;;  %p918_p2 = scmp.lt.u32.totalorder %s916_s11, %s911_s9 }
  0x46   : > { %p914_p12 = pnand %p913_p11, %p912_p10  ;;  %p920_p6 = scmp.lt.u32.totalorder %s911_s9, %s1131_s7 }
  0x47   : > { %p919_p3 = por %p918_p2, %p917_p0 }
  0x48   : > { %p915_p13 = pneg %p914_p12 }
  0x49   : > { %p921_p9 = por %p920_p6, %p919_p3 }
  0x4b   : > { %p922_p8 = pnand %p921_p9, %p915_p13 }
  0x4d   : > { %925 = shalt.err (!%p922_p8)
}
  0x4e   : > { %s926_s16 = scalar_lea.vmem %s1137_s14, 1024  ;;  %s985_s18 = smov [#allocation2]  }
  0x4f   : > { %p927_p1 = scmp.ne.s32.totalorder %s1137_s14, %s926_s16  ;;  %s931_s26 = sshll.u32 %s985_s18, 4  ;;  %s932_s26 = int_to_ptr.vmem [resolvable:$false] %s931_s26 }
  0x50   : > { %s933_s29 = scalar_lea.vmem %s932_s26, 2048  ;;  %p934_p10 = scmp.lt.s32.totalorder %s1137_s14, %s932_s26 }
  0x51   : > { %p929_p4 = pnand %p927_p1, %p913_p11  ;;  %p935_p12 = scmp.lt.s32.totalorder %s933_s29, %s926_s16 }
  0x53   : > { %p930_p5 = pneg %p929_p4  ;;  %p936_p0 = por %p935_p12, %p934_p10 }
  0x55   : > { %p937_p2 = pnand %p936_p0, %p930_p5 }
  0x57   : > { %940 = shalt.err (!%p937_p2)
}
  0x58   : > { %s986_s6 = smov 128   ;;  %s987_s30 = smov 8  }
  0x59   : > { %795 = dma.hbm_to_vmem [thread:$0]  (!%p1133_p7), %s1131_s7, 1024, %s1137_s14, %s1139_s8, %s986_s6, %s986_s6, %s987_s30  }
  0x5a   : > { %p1227_p11 = scmp.ne.s32.totalorder %s1224_s25, 0 }
  0x5b   : > { %s230_s9 = sand.u32 (!%p1227_p11), 1, %s971_s19   ;;  %p1228_p13 = scmp.ne.s32.totalorder (!%p1227_p11), %s1223_s24, 0 }
  0x5c   : > { %228 = sbr.rel (%p1227_p11) target bundleno = 584 (0x248), region = 40  ;;  %s677_s27 = sshll.u32 (!%p1227_p11), %s230_s9, 6 }
  0x5d   : > { %s231_s10 = scalar_lea.sflag (!%p1227_p11), [#allocation3], %s230_s9  ;;  %s1170_s11 = scalar_lea.vmem (!%p1227_p11), [#allocation2], %s677_s27 }
  0x63   : > { %958 = dma.done.wait (%p1228_p13), %s231_s10, 1024  }
  0x64   : > { %960 = vsyncadd (%p1228_p13), %s231_s10, 4294966272  ;;  %p1229_p3 = scmp.ne.s32.totalorder %s1222_s23, 0 }
  0x66   : > { %962 = dma.done.wait (%p1229_p3), [#allocation5], 2048  }
  0x67   : > { %964 = vsyncadd (%p1229_p3), [#allocation5], 4294965248  ;;  %v839_v0 = vld [vmem:[#allocation4] sm:$0xff]   ;;  %v840_v1 = vld [vmem:[#allocation4 + $0x8] sm:$0xff]   ;;  %s680_s25 = sshll.u32 %s667_s22, 3 }
  0x68   : > { %727 = vmatprep.subr.bf16.mxu0 %v839_v0  ;;  %v841_v2 = vld [vmem:[#allocation4 + $0x10] sm:$0xff]   ;;  %v842_v3 = vld [vmem:[#allocation4 + $0x18] sm:$0xff]   ;;  %v277_v4 = vld [vmem:[%s1170_s11] sm:$0xff]  ;;  %p271_p7 = scmp.lt.s32.totalorder %s680_s25, 31 }
  0x69   : > { %728 = vmatpush3.bf16.msra.mxu0 %v839_v0  ;;  %v278_v5 = vld [vmem:[%s1170_s11 + $0x8] sm:$0xff]  ;;  %v843_v7 = vld [vmem:[#allocation4 + $0x20] sm:$0xff]   ;;  %v849_v10 = vld [vmem:[#allocation6 + $0x10] sm:$0xff]  }
  0x6a   : > { %729 = vmatprep.subr.bf16.mxu0 %v840_v1  ;;  %v285_v6 = vpack.c.bf16 %v278_v5, %v277_v4  ;;  %v847_v8 = vld [vmem:[#allocation6] sm:$0xff]   ;;  %v848_v9 = vld [vmem:[#allocation6 + $0x8] sm:$0xff]   ;;  %v850_v12 = vld [vmem:[#allocation6 + $0x18] sm:$0xff]   ;;  %s1235_s25 = smov (!%p271_p7, %s680_s25), 31 }
  0x6b   : > { %751 = vmatprep.subr.bf16.mxu1 %v847_v8  ;;  %v844_v11 = vld [vmem:[#allocation4 + $0x28] sm:$0xff]   ;;  %v845_v13 = vld [vmem:[#allocation4 + $0x30] sm:$0xff]   ;;  %v851_v14 = vld [vmem:[#allocation6 + $0x20] sm:$0xff]   ;;  %s681_s7 = sshll.u32 %s1235_s25, 3 }
  0x6c   : > { %743 = vmatprep.mubr.bf16.mxu0 %v285_v6  ;;  %752 = vmatpush3.bf16.msra.mxu1 %v847_v8  ;;  %v846_v15 = vld [vmem:[#allocation4 + $0x38] sm:$0xff]   ;;  %v279_v16 = vld [vmem:[%s1170_s11 + $0x10] sm:$0xff]  ;;  %v852_v18 = vld [vmem:[#allocation6 + $0x28] sm:$0xff]   ;;  %s274_s28 = scalar_lea.vmem %s1217_s5, %s681_s7 }
  0x6d   : > { %730 = vmatpush3.bf16.msra.mxu0 %v840_v1  ;;  %753 = vmatprep.subr.bf16.mxu1 %v848_v9  ;;  %v280_v17 = vld [vmem:[%s1170_s11 + $0x18] sm:$0xff]  ;;  %v281_v19 = vld [vmem:[%s1170_s11 + $0x20] sm:$0xff]  ;;  %v282_v20 = vld [vmem:[%s1170_s11 + $0x28] sm:$0xff] }
  0x6e   : > { %731 = vmatprep.subr.bf16.mxu0 %v841_v2  ;;  %v286_v21 = vpack.c.bf16 %v280_v17, %v279_v16  ;;  %v287_v22 = vpack.c.bf16 %v282_v20, %v281_v19  ;;  %v283_v23 = vld [vmem:[%s1170_s11 + $0x30] sm:$0xff]  ;;  %v284_v24 = vld [vmem:[%s1170_s11 + $0x38] sm:$0xff]  ;;  %v682_v28 = vld [vmem:[%s1214_s2] ss:$0 sm:$0xff] }
  0x6f   : > { %v288_v25 = vpack.c.bf16 %v284_v24, %v283_v23  ;;  %v853_v26 = vld [vmem:[#allocation6 + $0x30] sm:$0xff]   ;;  %v854_v27 = vld [vmem:[#allocation6 + $0x38] sm:$0xff]   ;;  %v691_v57 = vld [vmem:[%s1216_s4] ss:$0 sm:$0xff] }
  0x70   : > { %754 = vmatpush3.bf16.msra.mxu1 %v848_v9 }
  0x71   : > { %732 = vmatpush3.bf16.msra.mxu0 %v841_v2  ;;  %755 = vmatprep.subr.bf16.mxu1 %v849_v10 }
  0x72   : > { %733 = vmatprep.subr.bf16.mxu0 %v842_v3 }
  0x74   : > { %756 = vmatpush3.bf16.msra.mxu1 %v849_v10 }
  0x75   : > { %734 = vmatpush3.bf16.msra.mxu0 %v842_v3  ;;  %757 = vmatprep.subr.bf16.mxu1 %v850_v12 }
  0x76   : > { %735 = vmatprep.subr.bf16.mxu0 %v843_v7 }
  0x78   : > { %758 = vmatpush3.bf16.msra.mxu1 %v850_v12 }
  0x79   : > { %736 = vmatpush3.bf16.msra.mxu0 %v843_v7  ;;  %759 = vmatprep.subr.bf16.mxu1 %v851_v14 }
  0x7a   : > { %737 = vmatprep.subr.bf16.mxu0 %v844_v11 }
  0x7c   : > { %760 = vmatpush3.bf16.msra.mxu1 %v851_v14 }
  0x7d   : > { %738 = vmatpush3.bf16.msra.mxu0 %v844_v11  ;;  %761 = vmatprep.subr.bf16.mxu1 %v852_v18 }
  0x7e   : > { %739 = vmatprep.subr.bf16.mxu0 %v845_v13 }
  0x80   : > { %762 = vmatpush3.bf16.msra.mxu1 %v852_v18 }
  0x81   : > { %740 = vmatpush3.bf16.msra.mxu0 %v845_v13  ;;  %763 = vmatprep.subr.bf16.mxu1 %v853_v26 }
  0x82   : > { %741 = vmatprep.subr.bf16.mxu0 %v846_v15 }
  0x84   : > { %764 = vmatpush3.bf16.msra.mxu1 %v853_v26 }
  0x85   : > { %742 = vmatpush3.bf16.msra.mxu0 %v846_v15  ;;  %765 = vmatprep.subr.bf16.mxu1 %v854_v27 }
  0x88   : > { %744 = vmatmul.mubr.bf16.vlgmr.msra.gmra.mrb[0].mxu0 %v286_v21  ;;  %766 = vmatpush3.bf16.msra.mxu1 %v854_v27 }
  0x89   : > { %747 = vmatprep.mubr.bf16.mxu0 %v287_v22 }
  0x90   : > { %748 = vmatmul.mubr.bf16.gmra.mrb[4].mxu0 %v288_v25 }
 0x15b   : > { %v745_v29 = vpop.f32.mrb[0].mxu0 }
 0x15c   : > { %v403_v30 = vadd.f32 %v745_v29, %v682_v28  ;;  %v394_v31 = vpop.f32.mrb[1].mxu0 }
 0x15d   : > { %v395_v32 = vadd.f32 %v682_v28, %v394_v31  ;;  %v746_v33 = vpop.f32.mrb[2].mxu0 }
 0x15e   : > { %v406_v34 = vadd.f32 %v746_v33, %v682_v28  ;;  %v397_v35 = vpop.f32.mrb[3].mxu0  ;;  %v427_v37 = vmax.f32 %v403_v30, 0.0 }
 0x15f   : > { %v398_v36 = vadd.f32 %v682_v28, %v397_v35  ;;  %v425_v39 = vmax.f32 %v395_v32, 0.0 }
 0x160   : > { %v428_v38 = vmax.f32 %v406_v34, 0.0 }
 0x161   : > { %v426_v40 = vmax.f32 %v398_v36, 0.0 }
 0x162   : > { %v434_v41 = vpack.c.bf16 %v428_v38, %v427_v37 }
 0x163   : > { %v749_v42 = vpop.f32.mrb[4].mxu0  ;;  %v433_v43 = vpack.c.bf16 %v426_v40, %v425_v39 }
 0x164   : > { %v419_v44 = vadd.f32 %v749_v42, %v682_v28  ;;  %v410_v45 = vpop.f32.mrb[5].mxu0 }
 0x165   : > { %v411_v46 = vadd.f32 %v682_v28, %v410_v45  ;;  %v750_v47 = vpop.f32.mrb[6].mxu0  ;;  %767 = vmatprep.mubr.bf16.mxu1 %v433_v43 }
 0x166   : > { %v422_v48 = vadd.f32 %v750_v47, %v682_v28  ;;  %v413_v49 = vpop.f32.mrb[7].mxu0  ;;  %768 = vmatmul.mubr.bf16.vlgmr.msra.gmra.mrb[0].mxu1 %v434_v41  ;;  %v431_v51 = vmax.f32 %v419_v44, 0.0 }
 0x167   : > { %v414_v50 = vadd.f32 %v682_v28, %v413_v49  ;;  %v429_v53 = vmax.f32 %v411_v46, 0.0 }
 0x168   : > { %v432_v52 = vmax.f32 %v422_v48, 0.0 }
 0x169   : > { %v430_v54 = vmax.f32 %v414_v50, 0.0 }
 0x16a   : > { %v436_v55 = vpack.c.bf16 %v432_v52, %v431_v51 }
 0x16b   : > { %v435_v56 = vpack.c.bf16 %v430_v54, %v429_v53 }
 0x16d   : > { %771 = vmatprep.mubr.bf16.mxu1 %v435_v56 }
 0x16e   : > { %772 = vmatmul.mubr.bf16.gmra.mrb[4].mxu1 %v436_v55 }
 0x239   : > { %v769_v58 = vpop.f32.mrb[0].mxu1 }
 0x23a   : > { %v551_v59 = vadd.f32 %v769_v58, %v691_v57  ;;  %v542_v60 = vpop.f32.mrb[1].mxu1 }
 0x23b   : > { %v543_v61 = vadd.f32 %v691_v57, %v542_v60  ;;  %v770_v62 = vpop.f32.mrb[2].mxu1 }
 0x23c   : > { %575 = vst [vmem:[%s274_s28 + $0x10] sm:$0xff] %v551_v59  ;;  %v554_v63 = vadd.f32 %v770_v62, %v691_v57  ;;  %v545_v0 = vpop.f32.mrb[3].mxu1 }
 0x23d   : > { %573 = vst [vmem:[%s274_s28] sm:$0xff] %v543_v61  ;;  %v546_v1 = vadd.f32 %v691_v57, %v545_v0 }
 0x23e   : > { %576 = vst [vmem:[%s274_s28 + $0x18] sm:$0xff] %v554_v63 }
 0x23f   : > { %574 = vst [vmem:[%s274_s28 + $0x8] sm:$0xff] %v546_v1 }
 0x241   : > { %v773_v2 = vpop.f32.mrb[4].mxu1 }
 0x242   : > { %v567_v3 = vadd.f32 %v773_v2, %v691_v57  ;;  %v558_v4 = vpop.f32.mrb[5].mxu1 }
 0x243   : > { %v559_v5 = vadd.f32 %v691_v57, %v558_v4  ;;  %v774_v6 = vpop.f32.mrb[6].mxu1 }
 0x244   : > { %579 = vst [vmem:[%s274_s28 + $0x30] sm:$0xff] %v567_v3  ;;  %v570_v7 = vadd.f32 %v774_v6, %v691_v57  ;;  %v561_v8 = vpop.f32.mrb[7].mxu1 }
 0x245   : > { %577 = vst [vmem:[%s274_s28 + $0x20] sm:$0xff] %v559_v5  ;;  %v562_v9 = vadd.f32 %v691_v57, %v561_v8 }
 0x246   : > { %580 = vst [vmem:[%s274_s28 + $0x38] sm:$0xff] %v570_v7 }
 0x247   : > { %578 = vst [vmem:[%s274_s28 + $0x28] sm:$0xff] %v562_v9 }
 0x248 PF: > { %p16_p6 = scmp.ge.s32.totalorder %s1114_s12, 6   ;;  %s1230_s18 = smov %s971_s19 }
 0x249   : > { %s1231_s19 = smov %s975_s20  ;;  %s1232_s20 = smov %s1125_s17 }
 0x24a   : > { %s1233_s21 = smov %s1114_s12  ;;  %18 = sbr.rel (!%p16_p6) target bundleno = 4 (0x4), region = 88 }
 0x251   :  { %603 = vsyncpa [#allocation3], 1 }
 0x252   :  { %605 = vsyncpa [#allocation3 + $0x1], 1 }
 0x253   :  { %606 = vsyncpa [#allocation5], 1 }

</bundles_post_ra>
